<compile_context>
chip_gen: v7x
topology: tpu7x:2x2x1
jax: 0.10.0
libtpu: 0.0.40
codegen_flags: <defaults>
</compile_context>

<pallas_src>
import jax
import jax.numpy as jnp
from jax import lax
from jax.experimental import pallas as pl
from jax.experimental.pallas import tpu as pltpu


# ---------------------------------------------------------------------------
# Helpers
# ---------------------------------------------------------------------------
def _round_up(x: int, m: int) -> int:
    return ((x + m - 1) // m) * m


def _pack_factor(hidden_dim: int) -> int:
    """Logical rows packed per 128-lane row (4 for hidden=32).  Falls back to 1
    (plain layout) when hidden_dim does not evenly divide the 128-lane width."""
    if hidden_dim < 128 and 128 % hidden_dim == 0:
        return 128 // hidden_dim
    return 1


def _block_diag(w: jnp.ndarray, p: int) -> jnp.ndarray:
    """[a, b] -> [p*a, p*b] block diagonal with p copies of w."""
    if p == 1:
        return w
    a, b = w.shape
    out = jnp.zeros((p * a, p * b), w.dtype)
    for j in range(p):
        out = out.at[j * a:(j + 1) * a, j * b:(j + 1) * b].set(w)
    return out


def _num_tensorcores() -> int:
    """2 on dual-TensorCore chips (v7x); 1 on v5e/v6e.  Trace-time query."""
    try:
        kind = (jax.devices()[0].device_kind or "").lower()
    except Exception:
        return 1
    return 2 if "v7" in kind else 1


def _pick_row_tile(n: int, block_rows: int, num_cores: int) -> int:
    """Sublane-aligned row tile.  Large (amortize ~0.35us/step overhead); only
    capped near n/2 when there are 2 TensorCores that can share the grid."""
    if n <= 8:
        return n
    tb = block_rows
    if num_cores >= 2:
        tb = min(tb, _round_up((n + 1) // 2, 8))
    if tb >= n:
        return n
    return max(8, (tb // 8) * 8)


# ---------------------------------------------------------------------------
# Row-packed MLP kernel:  relu(relu(xa @ wa + xb @ wb + b1) @ w2 + b2)
# (used by the forward path and by the flattened small-S inverse path)
# ---------------------------------------------------------------------------
def _mlp_kernel(xa_ref, xb_ref, wa_ref, wb_ref, b1_ref, w2_ref, b2_ref, o_ref):
    h = (jnp.dot(xa_ref[...], wa_ref[...], preferred_element_type=jnp.float32)
         + jnp.dot(xb_ref[...], wb_ref[...], preferred_element_type=jnp.float32)
         + b1_ref[...])
    h = jnp.maximum(h, 0.0)
    o = jnp.dot(h, w2_ref[...], preferred_element_type=jnp.float32) + b2_ref[...]
    o_ref[...] = jnp.maximum(o, 0.0).astype(o_ref.dtype)


def _mlp_pallas(xa, xb, wa, wb, b1, w2, b2, *, block_rows=1024):
    n, da = xa.shape
    db = xb.shape[1]
    dh = w2.shape[0]          # hidden * pack  (128-lane dense when possible)
    tb = _pick_row_tile(n, block_rows, _num_tensorcores())
    grid = (pl.cdiv(n, tb),)

    itemsize = jnp.dtype(xa.dtype).itemsize
    flops = 2 * n * (da + db) * dh + 2 * n * dh * dh
    bytes_accessed = itemsize * (xa.size + xb.size + wa.size + wb.size
                                 + b1.size + w2.size + b2.size + n * dh)

    return pl.pallas_call(
        _mlp_kernel,
        out_shape=jax.ShapeDtypeStruct((n, dh), xa.dtype),
        grid=grid,
        in_specs=[
            pl.BlockSpec((tb, da), lambda i: (i, 0)),     # packed "history" rows
            pl.BlockSpec((tb, db), lambda i: (i, 0)),     # packed Q rows
            pl.BlockSpec((da, dh), lambda i: (0, 0)),     # W1 (history part, bd)
            pl.BlockSpec((db, dh), lambda i: (0, 0)),     # W1 (Q part, bd)
            pl.BlockSpec((1, dh), lambda i: (0, 0)),      # b1 (lane-tiled)
            pl.BlockSpec((dh, dh), lambda i: (0, 0)),     # W2 (bd)
            pl.BlockSpec((1, dh), lambda i: (0, 0)),      # b2 (lane-tiled)
        ],
        out_specs=pl.BlockSpec((tb, dh), lambda i: (i, 0)),
        compiler_params=pltpu.CompilerParams(dimension_semantics=("parallel",)),
        cost_estimate=pl.CostEstimate(flops=flops, transcendentals=0,
                                      bytes_accessed=bytes_accessed),
    )(xa, xb, wa, wb, b1, w2, b2)


def _packed_rows_mlp(xa, xb, wa_bd, wb_bd, b1_t, w2_bd, b2_t, hidden, pack,
                     *, block_rows=1024):
    """Pack `pack` consecutive rows per 128-lane row (free reshapes), run the
    MLP kernel, unpack.  Pads the row count to a multiple of `pack`."""
    n = xa.shape[0]
    wa_w, wb_w = xa.shape[1], xb.shape[1]
    n_pad = _round_up(max(n, 1), pack)
    if n_pad != n:
        xa = jnp.pad(xa, ((0, n_pad - n), (0, 0)))
        xb = jnp.pad(xb, ((0, n_pad - n), (0, 0)))
    n_packed = n_pad // pack
    out = _mlp_pallas(xa.reshape(n_packed, pack * wa_w),
                      xb.reshape(n_packed, pack * wb_w),
                      wa_bd, wb_bd, b1_t, w2_bd, b2_t, block_rows=block_rows)
    out = out.reshape(n_pad, hidden)
    return out[:n] if n_pad != n else out


# ---------------------------------------------------------------------------
# Inverse path with a (batch, seq-tile) grid (used when S is large):
#   q [B, S, 1], params [B, hist] -> [B, S, hidden]
# The params contribution of the first Linear is sequence-invariant, so it is
# a tiny [1,hist] @ [hist, 128] matmul per tile; the [B, S, hist] broadcast is
# never materialized anywhere.
# ---------------------------------------------------------------------------
def _inv_kernel(q_ref, x2_ref, w1q_ref, w1h_ref, b1_ref, w2_ref, b2_ref, o_ref):
    hx2 = jnp.dot(x2_ref[0], w1h_ref[...],
                  preferred_element_type=jnp.float32) + b1_ref[...]   # [1, dh]
    h = jnp.dot(q_ref[0], w1q_ref[...],
                preferred_element_type=jnp.float32) + hx2             # [ts, dh]
    h = jnp.maximum(h, 0.0)
    o = jnp.dot(h, w2_ref[...], preferred_element_type=jnp.float32) + b2_ref[...]
    o_ref[0] = jnp.maximum(o, 0.0).astype(o_ref.dtype)


def _inverse_batched_seq(q, x2, w1q_bd, w1h_tiled, b1_t, w2_bd, b2_t,
                         hidden, pack, *, block_seq=2048):
    b, s, _ = q.shape
    hist = x2.shape[-1]
    dh = hidden * pack
    s_pad = _round_up(s, pack)
    if s_pad != s:
        q = jnp.pad(q, ((0, 0), (0, s_pad - s), (0, 0)))
    sp = s_pad // pack
    qp = q.reshape(b, sp, pack)            # free row-major reshape
    x2r = x2.reshape(b, 1, hist)           # keep blocks (1,1,hist)-legal

    ts = sp if sp <= block_seq else (block_seq // 8) * 8
    grid = (b, pl.cdiv(sp, ts))

    itemsize = jnp.dtype(q.dtype).itemsize
    flops = 2 * b * sp * pack * ((hist + 1) * hidden + hidden * hidden)
    bytes_accessed = itemsize * (qp.size + x2.size + w1q_bd.size
                                 + w1h_tiled.size + b1_t.size + w2_bd.size
                                 + b2_t.size + b * sp * dh)

    out = pl.pallas_call(
        _inv_kernel,
        out_shape=jax.ShapeDtypeStruct((b, sp, dh), q.dtype),
        grid=grid,
        in_specs=[
            pl.BlockSpec((1, ts, pack), lambda bi, si: (bi, si, 0)),  # Q tile
            pl.BlockSpec((1, 1, hist), lambda bi, si: (bi, 0, 0)),    # params row
            pl.BlockSpec((pack, dh), lambda bi, si: (0, 0)),          # W1[0] (bd)
            pl.BlockSpec((hist, dh), lambda bi, si: (0, 0)),          # W1[1:] tiled
            pl.BlockSpec((1, dh), lambda bi, si: (0, 0)),             # b1
            pl.BlockSpec((dh, dh), lambda bi, si: (0, 0)),            # W2 (bd)
            pl.BlockSpec((1, dh), lambda bi, si: (0, 0)),             # b2
        ],
        out_specs=pl.BlockSpec((1, ts, dh), lambda bi, si: (bi, si, 0)),
        compiler_params=pltpu.CompilerParams(
            dimension_semantics=("parallel", "parallel")),
        cost_estimate=pl.CostEstimate(flops=flops, transcendentals=0,
                                      bytes_accessed=bytes_accessed),
    )(qp, x2r, w1q_bd, w1h_tiled, b1_t, w2_bd, b2_t)

    out = out.reshape(b, s_pad, hidden)
    return out[:, :s] if s_pad != s else out


# ---------------------------------------------------------------------------
# Module wrapper
# ---------------------------------------------------------------------------
class AleatoricConditionerPallas:
    """JAX/Pallas port of AleatoricConditioner."""

    def __init__(self, history_dim: int, hidden_dim: int, key=None):
        self.history_dim = history_dim
        self.hidden_dim = hidden_dim
        d_in = history_dim + 1
        if key is None:
            key = jax.random.PRNGKey(42)
        k1, k2, k3, k4 = jax.random.split(key, 4)
        lim1 = 1.0 / jnp.sqrt(jnp.float32(d_in))
        lim2 = 1.0 / jnp.sqrt(jnp.float32(hidden_dim))
        # Stored as [in_features, out_features] (transpose of torch layout).
        self.w1 = jax.random.uniform(k1, (d_in, hidden_dim), jnp.float32, -lim1, lim1)
        self.b1 = jax.random.uniform(k2, (1, hidden_dim), jnp.float32, -lim1, lim1)
        self.w2 = jax.random.uniform(k3, (hidden_dim, hidden_dim), jnp.float32, -lim2, lim2)
        self.b2 = jax.random.uniform(k4, (1, hidden_dim), jnp.float32, -lim2, lim2)

        # --- precomputed lane-packed weights (rebuild if hidden_dim changes) ---
        p = _pack_factor(hidden_dim)
        self.pack = p
        h = history_dim
        # forward path concat is [history | Q]  -> Q is the LAST input column
        self.w1h_bd_f = _block_diag(self.w1[:h, :], p)           # [p*h, p*hid]
        self.w1q_bd_f = _block_diag(self.w1[h:h + 1, :], p)      # [p,   p*hid]
        # inverse path concat is [Q | params]   -> Q is the FIRST input column
        self.w1q_bd_i = _block_diag(self.w1[0:1, :], p)          # [p,   p*hid]
        self.w1h_bd_i = _block_diag(self.w1[1:, :], p)           # [p*h, p*hid]
        self.w1h_tiled_i = jnp.tile(self.w1[1:, :], (1, p))      # [h,   p*hid]
        self.w2_bd = _block_diag(self.w2, p)                     # [p*hid, p*hid]
        self.b1_t = jnp.tile(self.b1, (1, p))                    # [1, p*hid]
        self.b2_t = jnp.tile(self.b2, (1, p))                    # [1, p*hid]

    def __call__(self, x1, x2, inverse: bool = False, *,
                 inverse_seq_threshold: int = 1024):
        if inverse:
            # x1: [B, S, 1] Q-values ; x2: [B, history_dim] params
            assert x2.shape[-1] == self.history_dim, "param_dim must equal history_dim"
            b, s, _ = x1.shape
            sp = -(-s // self.pack)
            if sp >= inverse_seq_threshold:
                # Large S: (batch, seq-tile) grid; params broadcast never
                # materialized, each step covers >= ~2048 packed output rows.
                return _inverse_batched_seq(
                    x1, x2, self.w1q_bd_i, self.w1h_tiled_i, self.b1_t,
                    self.w2_bd, self.b2_t, self.hidden_dim, self.pack)
            # Small S: flatten (B,S) into packed rows and reuse the row-packed
            # kernel so the grid stays a few big parallel steps.  The tiny
            # params broadcast (~hist*4 B/row) is much cheaper than B grid
            # steps of ~0.35us overhead.
            hist = x2.shape[-1]
            x2b = jnp.broadcast_to(x2[:, None, :], (b, s, hist)).reshape(b * s, hist)
            qf = x1.reshape(b * s, 1)
            out = _packed_rows_mlp(x2b, qf, self.w1h_bd_i, self.w1q_bd_i,
                                   self.b1_t, self.w2_bd, self.b2_t,
                                   self.hidden_dim, self.pack)
            return out.reshape(b, s, self.hidden_dim)
        # forward: x1: [B, history_dim], x2: [B, 1]
        return _packed_rows_mlp(x1, x2, self.w1h_bd_f, self.w1q_bd_f,
                                self.b1_t, self.w2_bd, self.b2_t,
                                self.hidden_dim, self.pack)


def _reference(mod: AleatoricConditionerPallas, x1, x2, inverse=False):
    """Pure-JAX reference (explicit concat + full W1, highest-precision dots)."""
    if inverse:
        b, s, _ = x1.shape
        x2e = jnp.broadcast_to(x2[:, None, :], (b, s, x2.shape[-1]))
        inputs = jnp.concatenate([x1, x2e], axis=-1)
    else:
        inputs = jnp.concatenate([x1, x2], axis=-1)
    h = jnp.maximum(
        jnp.dot(inputs, mod.w1, precision=lax.Precision.HIGHEST) + mod.b1, 0.0)
    return jnp.maximum(
        jnp.dot(h, mod.w2, precision=lax.Precision.HIGHEST) + mod.b2, 0.0)


if __name__ == "__main__":
    key = jax.random.PRNGKey(0)
    k_x1, k_x2, k_q, k_p, k_x1b, k_x2b, k_q2, k_p2, k_q3, k_p3 = jax.random.split(key, 10)

    history_dim = 7     # -> d_in = 8
    hidden_dim = 32     # -> pack factor 4 (4 rows per 128-lane row)
    batch = 8
    seq = 8

    mod = AleatoricConditionerPallas(history_dim, hidden_dim,
                                     key=jax.random.PRNGKey(42))

    # --- forward path: x1 [B, history_dim], x2 [B, 1] ---
    x1 = jax.random.normal(k_x1, (batch, history_dim), jnp.float32)
    x2 = jax.random.normal(k_x2, (batch, 1), jnp.float32)
    out_fwd = mod(x1, x2)
    jax.block_until_ready(out_fwd)
    assert out_fwd.shape == (batch, hidden_dim)
    assert jnp.allclose(out_fwd, _reference(mod, x1, x2), atol=1e-4, rtol=1e-4)

    # --- forward path with a batch that needs pack padding (B=18) ---
    x1b = jax.random.normal(k_x1b, (18, history_dim), jnp.float32)
    x2b = jax.random.normal(k_x2b, (18, 1), jnp.float32)
    out_fwd_b = mod(x1b, x2b)
    jax.block_until_ready(out_fwd_b)
    assert out_fwd_b.shape == (18, hidden_dim)
    assert jnp.allclose(out_fwd_b, _reference(mod, x1b, x2b), atol=1e-4, rtol=1e-4)

    # --- inverse path, small S (flattened row-packed kernel) ---
    q = jax.random.normal(k_q, (batch, seq, 1), jnp.float32)
    params = jax.random.normal(k_p, (batch, history_dim), jnp.float32)
    out_inv = mod(q, params, inverse=True)
    jax.block_until_ready(out_inv)
    assert out_inv.shape == (batch, seq, hidden_dim)
    assert jnp.allclose(out_inv, _reference(mod, q, params, inverse=True),
                        atol=1e-4, rtol=1e-4)

    # --- inverse path, (batch, seq-tile) grid kernel (forced via threshold) ---
    q2 = jax.random.normal(k_q2, (4, 24, 1), jnp.float32)
    p2 = jax.random.normal(k_p2, (4, history_dim), jnp.float32)
    out_inv2 = mod(q2, p2, inverse=True, inverse_seq_threshold=1)
    jax.block_until_ready(out_inv2)
    assert out_inv2.shape == (4, 24, hidden_dim)
    assert jnp.allclose(out_inv2, _reference(mod, q2, p2, inverse=True),
                        atol=1e-4, rtol=1e-4)

    # --- inverse path, (batch, seq-tile) grid kernel with seq padding (S=10) ---
    q3 = jax.random.normal(k_q3, (3, 10, 1), jnp.float32)
    p3 = jax.random.normal(k_p3, (3, history_dim), jnp.float32)
    out_inv3 = mod(q3, p3, inverse=True, inverse_seq_threshold=1)
    jax.block_until_ready(out_inv3)
    assert out_inv3.shape == (3, 10, hidden_dim)
    assert jnp.allclose(out_inv3, _reference(mod, q3, p3, inverse=True),
                        atol=1e-4, rtol=1e-4)

    print("KERNEL_OK")
</pallas_src>

<mosaic_0001>
module attributes {stable_mosaic.version = 11 : i64} {
  func.func @_mlp_kernel(%arg0: i32, %arg1: memref<2x28xf32, #tpu.memory_space<vmem>>, %arg2: memref<2x4xf32, #tpu.memory_space<vmem>>, %arg3: memref<28x128xf32, #tpu.memory_space<vmem>>, %arg4: memref<4x128xf32, #tpu.memory_space<vmem>>, %arg5: memref<1x128xf32, #tpu.memory_space<vmem>>, %arg6: memref<128x128xf32, #tpu.memory_space<vmem>>, %arg7: memref<1x128xf32, #tpu.memory_space<vmem>>, %arg8: memref<2x128xf32, #tpu.memory_space<vmem>>) attributes {dimension_semantics = [#tpu.dimension_semantics<parallel>], iteration_bounds = array<i64: 1>, scalar_prefetch = 0 : i64, scratch_operands = 0 : i64, tpu.core_type = #tpu.core_type<tc>, window_params = [{transform_indices = @transform_0, window_bounds = array<i64: 2, 28>}, {transform_indices = @transform_1, window_bounds = array<i64: 2, 4>}, {pipeline_mode = #tpu.pipeline_mode<synchronous>, transform_indices = @transform_2, window_bounds = array<i64: 28, 128>}, {pipeline_mode = #tpu.pipeline_mode<synchronous>, transform_indices = @transform_3, window_bounds = array<i64: 4, 128>}, {pipeline_mode = #tpu.pipeline_mode<synchronous>, transform_indices = @transform_4, window_bounds = array<i64: 1, 128>}, {pipeline_mode = #tpu.pipeline_mode<synchronous>, transform_indices = @transform_5, window_bounds = array<i64: 128, 128>}, {pipeline_mode = #tpu.pipeline_mode<synchronous>, transform_indices = @transform_6, window_bounds = array<i64: 1, 128>}, {transform_indices = @transform_7, window_bounds = array<i64: 2, 128>}]} {
    %c0 = arith.constant 0 : index
    %c0_0 = arith.constant 0 : index
    %0 = vector.load %arg1[%c0, %c0_0] : memref<2x28xf32, #tpu.memory_space<vmem>>, vector<2x28xf32>
    %c0_1 = arith.constant 0 : index
    %c0_2 = arith.constant 0 : index
    %1 = vector.load %arg3[%c0_1, %c0_2] : memref<28x128xf32, #tpu.memory_space<vmem>>, vector<28x128xf32>
    %cst = arith.constant dense<0.000000e+00> : vector<2x128xf32>
    %2 = tpu.matmul %0, %1, %cst {dimension_numbers = #tpu.dot_dimension_numbers<[1], [0], [0], [1], [0, 0, 1, 1], [], []>} : vector<2x28xf32>, vector<28x128xf32>, vector<2x128xf32> -> vector<2x128xf32>
    %c0_3 = arith.constant 0 : index
    %c0_4 = arith.constant 0 : index
    %3 = vector.load %arg2[%c0_3, %c0_4] : memref<2x4xf32, #tpu.memory_space<vmem>>, vector<2x4xf32>
    %c0_5 = arith.constant 0 : index
    %c0_6 = arith.constant 0 : index
    %4 = vector.load %arg4[%c0_5, %c0_6] : memref<4x128xf32, #tpu.memory_space<vmem>>, vector<4x128xf32>
    %cst_7 = arith.constant dense<0.000000e+00> : vector<2x128xf32>
    %5 = tpu.matmul %3, %4, %cst_7 {dimension_numbers = #tpu.dot_dimension_numbers<[1], [0], [0], [1], [0, 0, 1, 1], [], []>} : vector<2x4xf32>, vector<4x128xf32>, vector<2x128xf32> -> vector<2x128xf32>
    %6 = arith.addf %2, %5 : vector<2x128xf32>
    %c0_8 = arith.constant 0 : index
    %c0_9 = arith.constant 0 : index
    %7 = vector.load %arg5[%c0_8, %c0_9] : memref<1x128xf32, #tpu.memory_space<vmem>>, vector<1x128xf32>
    %8 = vector.broadcast %7 : vector<1x128xf32> to vector<2x128xf32>
    %9 = arith.addf %6, %8 : vector<2x128xf32>
    %cst_10 = arith.constant 0.000000e+00 : f32
    %10 = vector.broadcast %cst_10 : f32 to vector<2x128xf32>
    %11 = arith.maximumf %9, %10 : vector<2x128xf32>
    %c0_11 = arith.constant 0 : index
    %c0_12 = arith.constant 0 : index
    %12 = vector.load %arg6[%c0_11, %c0_12] : memref<128x128xf32, #tpu.memory_space<vmem>>, vector<128x128xf32>
    %cst_13 = arith.constant dense<0.000000e+00> : vector<2x128xf32>
    %13 = tpu.matmul %11, %12, %cst_13 {dimension_numbers = #tpu.dot_dimension_numbers<[1], [0], [0], [1], [0, 0, 1, 1], [], []>} : vector<2x128xf32>, vector<128x128xf32>, vector<2x128xf32> -> vector<2x128xf32>
    %c0_14 = arith.constant 0 : index
    %c0_15 = arith.constant 0 : index
    %14 = vector.load %arg7[%c0_14, %c0_15] : memref<1x128xf32, #tpu.memory_space<vmem>>, vector<1x128xf32>
    %15 = vector.broadcast %14 : vector<1x128xf32> to vector<2x128xf32>
    %16 = arith.addf %13, %15 : vector<2x128xf32>
    %cst_16 = arith.constant 0.000000e+00 : f32
    %17 = vector.broadcast %cst_16 : f32 to vector<2x128xf32>
    %18 = arith.maximumf %16, %17 : vector<2x128xf32>
    %c0_17 = arith.constant 0 : index
    %c0_18 = arith.constant 0 : index
    %19 = vector.load %arg8[%c0_17, %c0_18] : memref<2x128xf32, #tpu.memory_space<vmem>>, vector<2x128xf32>
    tpu.vector_store %arg8[%c0_17, %c0_18], %18 {strides = array<i32>} : memref<2x128xf32, #tpu.memory_space<vmem>>, vector<2x128xf32>,
    return
  }
  func.func @transform_0(%arg0: i32) -> (i32, i32) {
    %c0_i32 = arith.constant 0 : i32
    %c0_i32_0 = arith.constant 0 : i32
    return %arg0, %c0_i32 : i32, i32
  }
  func.func @transform_1(%arg0: i32) -> (i32, i32) {
    %c0_i32 = arith.constant 0 : i32
    %c0_i32_0 = arith.constant 0 : i32
    return %arg0, %c0_i32 : i32, i32
  }
  func.func @transform_2(%arg0: i32) -> (i32, i32) {
    %c0_i32 = arith.constant 0 : i32
    %c0_i32_0 = arith.constant 0 : i32
    %c0_i32_1 = arith.constant 0 : i32
    return %c0_i32, %c0_i32_0 : i32, i32
  }
  func.func @transform_3(%arg0: i32) -> (i32, i32) {
    %c0_i32 = arith.constant 0 : i32
    %c0_i32_0 = arith.constant 0 : i32
    %c0_i32_1 = arith.constant 0 : i32
    return %c0_i32, %c0_i32_0 : i32, i32
  }
  func.func @transform_4(%arg0: i32) -> (i32, i32) {
    %c0_i32 = arith.constant 0 : i32
    %c0_i32_0 = arith.constant 0 : i32
    %c0_i32_1 = arith.constant 0 : i32
    return %c0_i32, %c0_i32_0 : i32, i32
  }
  func.func @transform_5(%arg0: i32) -> (i32, i32) {
    %c0_i32 = arith.constant 0 : i32
    %c0_i32_0 = arith.constant 0 : i32
    %c0_i32_1 = arith.constant 0 : i32
    return %c0_i32, %c0_i32_0 : i32, i32
  }
  func.func @transform_6(%arg0: i32) -> (i32, i32) {
    %c0_i32 = arith.constant 0 : i32
    %c0_i32_0 = arith.constant 0 : i32
    %c0_i32_1 = arith.constant 0 : i32
    return %c0_i32, %c0_i32_0 : i32, i32
  }
  func.func @transform_7(%arg0: i32) -> (i32, i32) {
    %c0_i32 = arith.constant 0 : i32
    %c0_i32_0 = arith.constant 0 : i32
    return %arg0, %c0_i32 : i32, i32
  }
}

</mosaic_0001>

<bundles_post_ra>
// kernel: tpu_custom_call.1
= control target key start
LH: loop header
LB: loop body
LE: loop exit
PB: predicated region body
PF: predicated region fallthrough
CT: control target
= control target key end

     0   :  { %12 = vsyncpa [#allocation3], 0  ;;  %s685_s0 = inlined_call_operand.hbm [shape: f32[2,28], index: 0, kind: input, shape index: {}]   ;;  %s686_s1 = inlined_call_operand.vmem [shape: f32[2,4], index: 1, kind: input, shape index: {}]   ;;  %s687_s2 = inlined_call_operand.hbm [shape: f32[28,128], index: 2, kind: input, shape index: {}]   ;;  %s688_s3 = inlined_call_operand.vmem [shape: f32[4,128], index: 3, kind: input, shape index: {}]   ;;  %s689_s4 = inlined_call_operand.vmem [shape: f32[1,128], index: 4, kind: input, shape index: {}]   ;;  %s690_s5 = inlined_call_operand.hbm [shape: f32[128,128], index: 5, kind: input, shape index: {}]   ;;  %s691_s6 = inlined_call_operand.vmem [shape: f32[1,128], index: 6, kind: input, shape index: {}]   ;;  %s692_s7 = inlined_call_operand.hbm [shape: f32[2,128], index: 7, kind: output, shape index: {}]  }
   0x1   :  { %13 = vsyncpa [#allocation6], 0 }
   0x2   :  { %14 = vsyncpa [#allocation4], 0  ;;  %s564_s24 = smov [#allocation5]   ;;  %s470_s28 = scalar_lea.hbm %s687_s2, 512 }
   0x3   :  { %s32_s25 = sshll.u32 %s564_s24, 4  ;;  %p471_p0 = scmp.ne.s32.totalorder %s687_s2, %s470_s28  ;;  %s33_s25 = int_to_ptr.vmem [resolvable:$true] %s32_s25 }
   0x4   :  { %p474_p1 = scmp.lt.u32.totalorder %s470_s28, %s687_s2 }
   0x6   :  { %p476_p2 = pnand %p474_p1, %p471_p0 }
   0x8   :  { %479 = shalt.err (!%p476_p2)
}
   0x9   :  { %s480_s10 = scalar_lea.vmem %s33_s25, 512  ;;  %p485_p4 = scmp.lt.s32.totalorder %s33_s25, %s33_s25 }
   0xa   :  { %p481_p3 = scmp.ne.s32.totalorder %s33_s25, %s480_s10  ;;  %p486_p5 = scmp.lt.s32.totalorder %s480_s10, %s480_s10 }
   0xc   :  { %p487_p6 = por %p486_p5, %p485_p4 }
   0xe   :  { %p488_p7 = pnand %p487_p6, %p481_p3 }
  0x10   :  { %491 = shalt.err (!%p488_p7)
}
  0x11   :  { %s565_s11 = smov 128   ;;  %s566_s12 = smov 8  }
  0x12   :  { %38 = dma.hbm_to_vmem [thread:$0]  %s687_s2, 512, %s33_s25, [#allocation6], %s565_s11, %s565_s11, %s566_s12  }
  0x13   :  { %s567_s15 = smov [#allocation2]   ;;  %s568_s17 = smov [#allocation7]  }
  0x14   :  { %s21_s16 = sshll.u32 %s567_s15, 4  ;;  %s48_s18 = sshll.u32 %s568_s17, 4  ;;  %s22_s16 = int_to_ptr.vmem [resolvable:$true] %s21_s16  ;;  %s49_s18 = int_to_ptr.vmem [resolvable:$true] %s48_s18 }
  0x15   :  { %s492_s21 = scalar_lea.hbm %s685_s0, 32 }
  0x16   :  { %p493_p8 = scmp.ne.s32.totalorder %s685_s0, %s492_s21  ;;  %p496_p9 = scmp.lt.u32.totalorder %s492_s21, %s685_s0 }
  0x18   :  { %p498_p10 = pnand %p496_p9, %p493_p8 }
  0x1a   :  { %501 = shalt.err (!%p498_p10)
}
  0x1b   :  { %s502_s2 = scalar_lea.vmem %s22_s16, 32  ;;  %p507_p12 = scmp.lt.s32.totalorder %s22_s16, %s22_s16 }
  0x1c   :  { %p503_p11 = scmp.ne.s32.totalorder %s22_s16, %s502_s2  ;;  %p508_p13 = scmp.lt.s32.totalorder %s502_s2, %s502_s2 }
  0x1e   :  { %p509_p0 = por %p508_p13, %p507_p12 }
  0x20   :  { %p510_p1 = pnand %p509_p0, %p503_p11 }
  0x22   :  { %513 = shalt.err (!%p510_p1)
}
  0x23   :  { %24 = dma.hbm_to_vmem [thread:$0]  %s685_s0, 32, %s22_s16, [#allocation3]  }
  0x24   :  { %s514_s30 = scalar_lea.hbm %s690_s5, 2048 }
  0x25   :  { %p515_p2 = scmp.ne.s32.totalorder %s690_s5, %s514_s30  ;;  %p518_p3 = scmp.lt.u32.totalorder %s514_s30, %s690_s5 }
  0x27   :  { %p520_p4 = pnand %p518_p3, %p515_p2 }
  0x29   :  { %523 = shalt.err (!%p520_p4)
}
  0x2a   :  { %s524_s14 = scalar_lea.vmem %s49_s18, 2048  ;;  %p529_p6 = scmp.lt.s32.totalorder %s49_s18, %s49_s18 }
  0x2b   :  { %p525_p5 = scmp.ne.s32.totalorder %s49_s18, %s524_s14  ;;  %p530_p7 = scmp.lt.s32.totalorder %s524_s14, %s524_s14 }
  0x2d   :  { %p531_p8 = por %p530_p7, %p529_p6 }
  0x2f   :  { %p532_p9 = pnand %p531_p8, %p525_p5 }
  0x31   :  { %535 = shalt.err (!%p532_p9)
}
  0x32   :  { %54 = dma.hbm_to_vmem [thread:$0]  %s690_s5, 2048, %s49_s18, [#allocation6], %s565_s11, %s565_s11, %s566_s12  }
  0x33   :  { %558 = dma.done.wait [#allocation3], 32  }
  0x34   :  { %559 = vsyncadd [#allocation3], 4294967264 }
  0x35   :  { %560 = dma.done.wait [#allocation6], 2560  }
  0x36   :  { %561 = vsyncadd [#allocation6], 4294964736  ;;  %v569_v0 = vmov 0.0   ;;  %vm570_vm0 = vmmov 0   ;;  %v571_v1 = vmov 0.0|0.0   ;;  %vm77_vm1 = vcmask 1043456  }
  0x37   :  { %378 = vmatprep.subr.mxu1 %v569_v0  ;;  %380 = vmatprep.mubr.msk.f32.mxu1 %vm570_vm0, %v569_v0  ;;  %vm73_vm2 = vcmask 31744   ;;  %v72_v2 = vld [vmem:[%s688_s3] sm:$0xf]  ;;  %v67_v4 = vld [vmem:[#allocation5] sm:$0xff]  ;;  %v68_v5 = vld [vmem:[#allocation5 + $0x8] sm:$0xff]  ;;  %vm572_vm3 = vmmov 1  }
  0x38   :  { %436 = vmatprep.subr.bf16.mxu0 %v571_v1  ;;  %426 = vmatprep.mubr.msk.f32.mxu0 %vm570_vm0, %v569_v0  ;;  %v71_v3 = vld [vmem:[%s686_s1] sm:$0x3]  ;;  %v70_v7 = vld [vmem:[#allocation5 + $0x18] sm:$0xf]  ;;  %v430_v8 = vpack.c.bf16 %v68_v5, %v67_v4  ;;  %v237_v9 = vld [vmem:[#allocation7] sm:$0xff]  ;;  %vm151_vm5 = vcmask 228352  }
  0x39   :  { %379 = vmatpush3.msk.msra.mxu1 %vm77_vm1, %v72_v2  ;;  %v69_v6 = vld [vmem:[#allocation5 + $0x10] sm:$0xff]  ;;  %v238_v10 = vld [vmem:[#allocation7 + $0x8] sm:$0xff]  ;;  %v240_v13 = vld [vmem:[#allocation7 + $0x18] sm:$0xff]  ;;  %s573_s19 = smov [#allocation8]  }
  0x3a   :  { %381 = vmatmul.mubr.msk.f32.vlgmr.msra.gmra.mrb[0].mxu1 %vm73_vm2, %v71_v3  ;;  %429 = vmatprep.subr.bf16.mxu1 %v571_v1  ;;  %v437_v11 = vpack.c.bf16 %v238_v10, %v237_v9  ;;  %v239_v12 = vld [vmem:[#allocation7 + $0x10] sm:$0xff]  ;;  %v433_v14 = vpack.c.bf16 %v70_v7, %v69_v6  ;;  %vm434_vm4 = vmpackc.low %vm77_vm1, %vm572_vm3  ;;  %v241_v16 = vld [vmem:[#allocation7 + $0x20] sm:$0xff]  ;;  %s338_s20 = sshll.u32 %s573_s19, 4  ;;  %s339_s20 = int_to_ptr.vmem [resolvable:$true] %s338_s20 }
  0x3b   :  { %391 = vmatprep.mubr.msk.f32.mxu1 %vm570_vm0, %v569_v0  ;;  %431 = vmatpush3.bf16.msra.mxu1 %v430_v8  ;;  %v440_v15 = vpack.c.bf16 %v240_v13, %v239_v12  ;;  %v242_v17 = vld [vmem:[#allocation7 + $0x28] sm:$0xff]  ;;  %v66_v18 = vld [vmem:[#allocation2] sm:$0x3]  ;;  %v243_v20 = vld [vmem:[#allocation7 + $0x30] sm:$0xff]  ;;  %s536_s21 = scalar_lea.vmem %s339_s20, 32  ;;  %p541_p11 = scmp.lt.s32.totalorder %s339_s20, %s339_s20 }
  0x3c   :  { %432 = vmatprep.subr.bf16.mxu1 %v571_v1  ;;  %438 = vmatpush3.bf16.msra.mxu0 %v437_v11  ;;  %v443_v19 = vpack.c.bf16 %v242_v17, %v241_v16  ;;  %v244_v21 = vld [vmem:[#allocation7 + $0x38] sm:$0xff]  ;;  %v245_v23 = vld [vmem:[#allocation7 + $0x40] sm:$0xff]  ;;  %v246_v24 = vld [vmem:[#allocation7 + $0x48] sm:$0xff]  ;;  %p537_p10 = scmp.ne.s32.totalorder %s339_s20, %s536_s21  ;;  %p542_p12 = scmp.lt.s32.totalorder %s536_s21, %s536_s21 }
  0x3d   :  { %439 = vmatprep.subr.bf16.mxu0 %v571_v1  ;;  %v446_v22 = vpack.c.bf16 %v244_v21, %v243_v20  ;;  %v449_v25 = vpack.c.bf16 %v246_v24, %v245_v23  ;;  %v247_v26 = vld [vmem:[#allocation7 + $0x50] sm:$0xff]  ;;  %v248_v27 = vld [vmem:[#allocation7 + $0x58] sm:$0xff]  ;;  %v249_v29 = vld [vmem:[#allocation7 + $0x60] sm:$0xff] }
  0x3e   :  { %v452_v28 = vpack.c.bf16 %v248_v27, %v247_v26  ;;  %v250_v30 = vld [vmem:[#allocation7 + $0x68] sm:$0xff]  ;;  %v251_v32 = vld [vmem:[#allocation7 + $0x70] sm:$0xff]  ;;  %v252_v33 = vld [vmem:[#allocation7 + $0x78] sm:$0xff]  ;;  %p543_p13 = por %p542_p12, %p541_p11 }
  0x3f   :  { %435 = vmatpush3.bf16.msk.msra.mxu1 %vm434_vm4, %v433_v14  ;;  %v455_v31 = vpack.c.bf16 %v250_v30, %v249_v29  ;;  %v458_v34 = vpack.c.bf16 %v252_v33, %v251_v32  ;;  %v352_v38 = vld [vmem:[%s689_s4] ss:$0 sm:$0xff] }
  0x40   :  { %441 = vmatpush3.bf16.msra.mxu0 %v440_v15  ;;  %v353_v43 = vld [vmem:[%s691_s6] ss:$0 sm:$0xff]  ;;  %p544_p0 = pnand %p543_p13, %p537_p10 }
  0x41   :  { %442 = vmatprep.subr.bf16.mxu0 %v571_v1 }
  0x42   :  { %392 = vmatmul.mubr.msk.f32.vlgmr.msra.gmra.mrb[2].mxu1 %vm151_vm5, %v66_v18 }
  0x44   :  { %444 = vmatpush3.bf16.msra.mxu0 %v443_v19 }
  0x45   :  { %445 = vmatprep.subr.bf16.mxu0 %v571_v1 }
  0x48   :  { %447 = vmatpush3.bf16.msra.mxu0 %v446_v22 }
  0x49   :  { %448 = vmatprep.subr.bf16.mxu0 %v571_v1 }
  0x4c   :  { %450 = vmatpush3.bf16.msra.mxu0 %v449_v25 }
  0x4d   :  { %451 = vmatprep.subr.bf16.mxu0 %v571_v1 }
  0x50   :  { %453 = vmatpush3.bf16.msra.mxu0 %v452_v28 }
  0x51   :  { %454 = vmatprep.subr.bf16.mxu0 %v571_v1 }
  0x54   :  { %456 = vmatpush3.bf16.msra.mxu0 %v455_v31 }
  0x55   :  { %457 = vmatprep.subr.bf16.mxu0 %v571_v1 }
  0x58   :  { %459 = vmatpush3.bf16.msra.mxu0 %v458_v34 }
 0x10d   :  { %v147_v35 = vpop.f32.mrb[0].mxu1 }
 0x10e   :  { %v382_v36 = vpop.f32.mrb[1].mxu1 }
 0x115   :  { %v224_v37 = vpop.f32.mrb[2].mxu1 }
 0x116   :  { %v225_v39 = vadd.f32 %v224_v37, %v147_v35  ;;  %v393_v40 = vpop.f32.mrb[3].mxu1 }
 0x118   :  { %v235_v41 = vadd.f32 %v352_v38, %v225_v39 }
 0x11a   :  { %v236_v42 = vmax.f32 %v235_v41, 0.0 }
 0x11c   :  { %427 = vmatmul.mubr.f32.vlgmr.msra.gmra.mrb[0].mxu0 %v236_v42 }
 0x1ef   :  { %v326_v44 = vpop.f32.mrb[0].mxu0 }
 0x1f0   :  { %v327_v45 = vadd.f32 %v353_v43, %v326_v44  ;;  %v428_v46 = vpop.f32.mrb[1].mxu0 }
 0x1f2   :  { %v330_v47 = vmax.f32 %v327_v45, 0.0 }
 0x1f4   :  { %331 = vst [vmem:[#allocation8] sm:$0x3] %v330_v47 }
 0x1f5   :  { %547 = shalt.err (!%p544_p0)
}
 0x1f6   :  { %s548_s23 = scalar_lea.hbm %s692_s7, 32 }
 0x1f7   :  { %p549_p1 = scmp.ne.s32.totalorder %s692_s7, %s548_s23  ;;  %p552_p2 = scmp.lt.u32.totalorder %s548_s23, %s692_s7 }
 0x1f9   :  { %p554_p3 = pnand %p552_p2, %p549_p1 }
 0x1fb   :  { %557 = shalt.err (!%p554_p3)
}
 0x1fc   :  { %341 = dma.vmem_to_hbm [thread:$0]  %s339_s20, 32, %s692_s7, [#allocation4]  }
 0x1fd   :  { %562 = dma.done.wait [#allocation4], 32  }
 0x1fe   :  { %563 = vsyncadd [#allocation4], 4294967264 }
 0x1ff   :  { %345 = vsyncpa [#allocation3], 1 }
 0x200   :  { %346 = vsyncpa [#allocation6], 1 }
 0x201   :  { %347 = vsyncpa [#allocation4], 1 }

</bundles_post_ra>
